<compile_context>
chip_gen: v7x
topology: tpu7x:2x2x1
jax: 0.10.0
libtpu: 0.0.40
codegen_flags: <defaults>
</compile_context>

<pallas_src>
import numpy as np
import jax
import jax.numpy as jnp
from jax.experimental import pallas as pl
from jax.experimental.pallas import tpu as pltpu


# ----------------------------- hyperparameters ------------------------------
class hp:
    Nz = 32                # latent size
    dec_hidden_size = 32   # LSTM hidden size
    M = 4                  # number of mixture components
    Nmax = 7               # training sequence length = Nmax + 1
    dropout = 0.0          # single-layer LSTM -> dropout is a no-op


B_PAD = 8                              # pad batch 2 -> full sublane group
IN = 5 + hp.Nz                         # 37 LSTM input features
IN_PAD = ((IN + 7) // 8) * 8           # 40
H = hp.dec_hidden_size                 # 32
G = 4 * H                              # 128 (gate width / output lane width)
P = 6 * hp.M + 3                       # 27 GMM-head outputs
SLAB_ROWS = H + 2 * IN_PAD + 16        # 128 rows in the packed weight slab


# ------------------------ fused decoder forward kernel -----------------------
def decoder_kernel(data_ref, w_ref, out_ref):
    """fc_hc + fully-unrolled single-layer LSTM + fused fc_params in VMEM."""
    Bp = B_PAD
    TB = out_ref.shape[0] - Bp            # T * B_PAD rows of y
    T = TB // Bp
    rb = H + 2 * IN_PAD                   # bias rows start (112)

    # Static ref slices into the packed weight slab (zero runtime cost).
    rhs   = w_ref[0:H, :]                 # (H, 2G)   [W_hh^T | W_p^T(pad)]
    w_ih  = w_ref[H:H + IN_PAD, 0:G]      # (IN_PAD, G)
    w_hc  = w_ref[H + IN_PAD:rb, 0:2 * H]  # (IN_PAD, 2H)
    b_hc  = w_ref[rb:rb + 1, 0:2 * H]     # (1, 2H)
    b_all = w_ref[rb + 8:rb + 9, :]       # (1, 2G)   [b_ih + b_hh | b_params]

    x  = data_ref[0:TB, :]                # (T*Bp, IN_PAD)
    zr = data_ref[TB:TB + Bp, :]          # (Bp, IN_PAD), z in lanes [0:Nz)

    # hidden, cell = split(tanh(fc_hc(z)), H, dim=1)
    hc = jnp.tanh(jnp.dot(zr, w_hc, preferred_element_type=jnp.float32) + b_hc)
    h = hc[:, 0:H]
    c = hc[:, H:2 * H]

    # Input projection for every step at once (off the serial critical path).
    gx = jnp.dot(x, w_ih, preferred_element_type=jnp.float32)      # (T*Bp, G)

    # Fused serial matmul: lanes [0:G) -> h@W_hh (+ b_lstm),
    #                      lanes [G:2G) -> h@W_p  (+ b_params) == y for that h.
    hg = jnp.dot(h, rhs, preferred_element_type=jnp.float32) + b_all

    for t in range(T):                    # static unroll, T = 8
        gates = gx[t * Bp:(t + 1) * Bp, :] + hg[:, 0:G]             # (Bp, G)
        sg = jax.nn.sigmoid(gates)        # one full-vreg EUP call
        tg = jnp.tanh(gates)              # one full-vreg EUP call
        i = sg[:, 0:H]
        f = sg[:, H:2 * H]
        g = tg[:, 2 * H:3 * H]
        o = sg[:, 3 * H:4 * H]
        c = f * c + i * g
        h = o * jnp.tanh(c)
        hg = jnp.dot(h, rhs, preferred_element_type=jnp.float32) + b_all
        out_ref[t * Bp:(t + 1) * Bp, :] = hg[:, G:2 * G]            # y_t, lane dense

    # Final hidden/cell packed into the trailing row block: [h | c | 0].
    out_ref[TB:TB + Bp, :] = jnp.concatenate(
        [h, c, jnp.zeros((Bp, G - 2 * H), jnp.float32)], axis=1)


# ----------------------- one-time (off hot path) weight prep -----------------
def prepare_params(params):
    """Pack every weight/bias into ONE (SLAB_ROWS, 2G) f32 slab.

    Includes transposes, bias fusion, GMM column permutation
    ([pi | mu_x | mu_y | sigma_x | sigma_y | rho | pen]) and zero padding.
    """
    M, Nz = hp.M, hp.Nz
    perm = np.concatenate([np.arange(M) * 6 + k for k in range(6)]
                          + [6 * M + np.arange(3)])
    w_p = jnp.asarray(params["w_params"], jnp.float32).T[:, perm]   # (H, P)
    b_p = jnp.asarray(params["b_params"], jnp.float32)[perm]        # (P,)

    slab = jnp.zeros((SLAB_ROWS, 2 * G), jnp.float32)
    # rows [0, H): fused recurrent RHS  [W_hh^T | W_p^T]
    slab = slab.at[0:H, 0:G].set(jnp.asarray(params["w_hh"], jnp.float32).T)
    slab = slab.at[0:H, G:G + P].set(w_p)
    # rows [H, H+IN_PAD): W_ih^T, input dim zero-padded 37 -> 40
    slab = slab.at[H:H + IN, 0:G].set(jnp.asarray(params["w_ih"], jnp.float32).T)
    # rows [H+IN_PAD, H+2*IN_PAD): W_hc^T (only Nz rows used; the zero rows
    # match the zero-padded lanes of the z block in the data slab)
    slab = slab.at[H + IN_PAD:H + IN_PAD + Nz, 0:2 * H].set(
        jnp.asarray(params["w_hc"], jnp.float32).T)
    rb = H + 2 * IN_PAD
    # bias rows (each at a sublane-group boundary)
    slab = slab.at[rb, 0:2 * H].set(jnp.asarray(params["b_hc"], jnp.float32))
    slab = slab.at[rb + 8, 0:G].set(jnp.asarray(params["b_ih"], jnp.float32)
                                    + jnp.asarray(params["b_hh"], jnp.float32))
    slab = slab.at[rb + 8, G:G + P].set(b_p)
    return slab


# ------------------------------- wrapper -------------------------------------
def decoder_forward(inputs, z, slab):
    """Training-mode forward of DecoderRNN with hidden_cell=None."""
    T, B, _ = inputs.shape
    M = hp.M
    TB = T * B_PAD

    # Pad batch -> 8 sublanes, features -> 40 lanes; append z as one extra
    # B_PAD-row block so the kernel receives a single data operand.
    x_pad = jnp.zeros((T, B_PAD, IN_PAD), jnp.float32).at[:, :B, :IN].set(inputs)
    z_pad = jnp.zeros((1, B_PAD, IN_PAD), jnp.float32).at[0, :B, :hp.Nz].set(z)
    data = jnp.concatenate([x_pad, z_pad], axis=0).reshape(TB + B_PAD, IN_PAD)

    out = pl.pallas_call(
        decoder_kernel,
        out_shape=jax.ShapeDtypeStruct((TB + B_PAD, G), jnp.float32),
        in_specs=[pl.BlockSpec(memory_space=pltpu.MemorySpace.VMEM),
                  pl.BlockSpec(memory_space=pltpu.MemorySpace.VMEM)],
        out_specs=pl.BlockSpec(memory_space=pltpu.MemorySpace.VMEM),
    )(data, slab)

    # Crop padding; the tiny GMM-head activations are one XLA fusion.
    y3 = out[:TB].reshape(T, B_PAD, G)[:, :B, :P]                   # (T, B, 27)
    pi      = jax.nn.softmax(y3[..., 0 * M:1 * M], axis=-1)
    mu_x    = y3[..., 1 * M:2 * M]
    mu_y    = y3[..., 2 * M:3 * M]
    sigma_x = jnp.exp(y3[..., 3 * M:4 * M])
    sigma_y = jnp.exp(y3[..., 4 * M:5 * M])
    rho_xy  = jnp.tanh(y3[..., 5 * M:6 * M])
    q       = jax.nn.softmax(y3[..., 6 * M:6 * M + 3], axis=-1)
    hidden  = out[TB:TB + B_PAD, 0:H][:B][None]                     # (1, B, H)
    cell    = out[TB:TB + B_PAD, H:2 * H][:B][None]                 # (1, B, H)
    return pi, mu_x, mu_y, sigma_x, sigma_y, rho_xy, q, hidden, cell


decoder_forward_jit = jax.jit(decoder_forward)


# --------------------------- pure-JAX reference -------------------------------
def decoder_reference(inputs, z, params):
    """Plain-JAX re-implementation of the PyTorch module (training mode)."""
    M = hp.M
    T, B, _ = inputs.shape
    hc = jnp.tanh(z @ params["w_hc"].T + params["b_hc"])
    h, c = hc[:, :H], hc[:, H:]
    b = params["b_ih"] + params["b_hh"]
    outs = []
    for t in range(T):
        gates = inputs[t] @ params["w_ih"].T + h @ params["w_hh"].T + b
        i = jax.nn.sigmoid(gates[:, :H])
        f = jax.nn.sigmoid(gates[:, H:2 * H])
        g = jnp.tanh(gates[:, 2 * H:3 * H])
        o = jax.nn.sigmoid(gates[:, 3 * H:])
        c = f * c + i * g
        h = o * jnp.tanh(c)
        outs.append(h)
    outputs = jnp.stack(outs)                               # (T, B, H)
    y = outputs.reshape(T * B, H) @ params["w_params"].T + params["b_params"]
    y = y.reshape(T, B, 6 * M + 3)                          # col 6j+k: comp j, param k
    comp = jnp.arange(M) * 6
    pi = jax.nn.softmax(y[..., comp + 0], axis=-1)
    mu_x, mu_y = y[..., comp + 1], y[..., comp + 2]
    sigma_x, sigma_y = jnp.exp(y[..., comp + 3]), jnp.exp(y[..., comp + 4])
    rho_xy = jnp.tanh(y[..., comp + 5])
    q = jax.nn.softmax(y[..., 6 * M:], axis=-1)
    return pi, mu_x, mu_y, sigma_x, sigma_y, rho_xy, q, h[None], c[None]


# --------------------------- deterministic params ----------------------------
def init_params(key):
    Nz, M = hp.Nz, hp.M
    ks = jax.random.split(key, 8)
    s = 0.1
    return {
        "w_hc": jax.random.normal(ks[0], (2 * H, Nz), jnp.float32) * s,
        "b_hc": jax.random.normal(ks[1], (2 * H,), jnp.float32) * s,
        "w_ih": jax.random.normal(ks[2], (4 * H, 5 + Nz), jnp.float32) * s,
        "w_hh": jax.random.normal(ks[3], (4 * H, H), jnp.float32) * s,
        "b_ih": jax.random.normal(ks[4], (4 * H,), jnp.float32) * s,
        "b_hh": jax.random.normal(ks[5], (4 * H,), jnp.float32) * s,
        "w_params": jax.random.normal(ks[6], (6 * M + 3, H), jnp.float32) * s,
        "b_params": jax.random.normal(ks[7], (6 * M + 3,), jnp.float32) * s,
    }


if __name__ == "__main__":
    key = jax.random.PRNGKey(0)
    kp, ki, kz = jax.random.split(key, 3)
    params = init_params(kp)
    slab = prepare_params(params)             # one-time prep, off the hot path

    T, B = hp.Nmax + 1, 2
    inputs = jax.random.normal(ki, (T, B, 5 + hp.Nz), jnp.float32)
    z = jax.random.normal(kz, (B, hp.Nz), jnp.float32)

    out = decoder_forward_jit(inputs, z, slab)
    out = jax.block_until_ready(out)

    pi, mu_x, mu_y, sigma_x, sigma_y, rho_xy, q, hidden, cell = out
    assert pi.shape == (T, B, hp.M)
    assert sigma_x.shape == (T, B, hp.M) and rho_xy.shape == (T, B, hp.M)
    assert q.shape == (T, B, 3)
    assert hidden.shape == (1, B, hp.dec_hidden_size)
    assert cell.shape == (1, B, hp.dec_hidden_size)

    ref = decoder_reference(inputs, z, params)
    for got, want in zip(out, ref):
        np.testing.assert_allclose(np.asarray(got), np.asarray(want),
                                   rtol=1e-4, atol=1e-4)
    print("KERNEL_OK")
</pallas_src>

<mosaic_0001>
module attributes {stable_mosaic.version = 11 : i64} {
  func.func @decoder_kernel(%arg0: memref<72x40xf32, #tpu.memory_space<vmem>>, %arg1: memref<128x256xf32, #tpu.memory_space<vmem>>, %arg2: memref<72x128xf32, #tpu.memory_space<vmem>>) attributes {dimension_semantics = [], scalar_prefetch = 0 : i64, scratch_operands = 0 : i64, tpu.core_type = #tpu.core_type<tc>} {
    %c0 = arith.constant 0 : index
    %c0_0 = arith.constant 0 : index
    %0 = vector.load %arg1[%c0, %c0_0] : memref<128x256xf32, #tpu.memory_space<vmem>>, vector<32x256xf32>
    %c32 = arith.constant 32 : index
    %c0_1 = arith.constant 0 : index
    %1 = vector.load %arg1[%c32, %c0_1] : memref<128x256xf32, #tpu.memory_space<vmem>>, vector<40x128xf32>
    %c72 = arith.constant 72 : index
    %c0_2 = arith.constant 0 : index
    %2 = vector.load %arg1[%c72, %c0_2] : memref<128x256xf32, #tpu.memory_space<vmem>>, vector<40x64xf32>
    %c112 = arith.constant 112 : index
    %c0_3 = arith.constant 0 : index
    %3 = vector.load %arg1[%c112, %c0_3] : memref<128x256xf32, #tpu.memory_space<vmem>>, vector<1x64xf32>
    %c120 = arith.constant 120 : index
    %c0_4 = arith.constant 0 : index
    %4 = vector.load %arg1[%c120, %c0_4] : memref<128x256xf32, #tpu.memory_space<vmem>>, vector<1x256xf32>
    %c0_5 = arith.constant 0 : index
    %c0_6 = arith.constant 0 : index
    %5 = vector.load %arg0[%c0_5, %c0_6] : memref<72x40xf32, #tpu.memory_space<vmem>>, vector<64x40xf32>
    %c64 = arith.constant 64 : index
    %c0_7 = arith.constant 0 : index
    %6 = vector.load %arg0[%c64, %c0_7] : memref<72x40xf32, #tpu.memory_space<vmem>>, vector<8x40xf32>
    %cst = arith.constant dense<0.000000e+00> : vector<8x64xf32>
    %7 = tpu.matmul %6, %2, %cst {dimension_numbers = #tpu.dot_dimension_numbers<[1], [0], [0], [1], [0, 0, 1, 1], [], []>} : vector<8x40xf32>, vector<40x64xf32>, vector<8x64xf32> -> vector<8x64xf32>
    %8 = vector.broadcast %3 : vector<1x64xf32> to vector<8x64xf32>
    %9 = arith.addf %7, %8 : vector<8x64xf32>
    %10 = math.tanh %9 : vector<8x64xf32>
    %11 = vector.extract_strided_slice %10 {offsets = [0, 0], sizes = [8, 32], strides = [1, 1]} : vector<8x64xf32> to vector<8x32xf32>
    %12 = vector.extract_strided_slice %10 {offsets = [0, 32], sizes = [8, 32], strides = [1, 1]} : vector<8x64xf32> to vector<8x32xf32>
    %cst_8 = arith.constant dense<0.000000e+00> : vector<64x128xf32>
    %13 = tpu.matmul %5, %1, %cst_8 {dimension_numbers = #tpu.dot_dimension_numbers<[1], [0], [0], [1], [0, 0, 1, 1], [], []>} : vector<64x40xf32>, vector<40x128xf32>, vector<64x128xf32> -> vector<64x128xf32>
    %cst_9 = arith.constant dense<0.000000e+00> : vector<8x256xf32>
    %14 = tpu.matmul %11, %0, %cst_9 {dimension_numbers = #tpu.dot_dimension_numbers<[1], [0], [0], [1], [0, 0, 1, 1], [], []>} : vector<8x32xf32>, vector<32x256xf32>, vector<8x256xf32> -> vector<8x256xf32>
    %15 = vector.broadcast %4 : vector<1x256xf32> to vector<8x256xf32>
    %16 = arith.addf %14, %15 : vector<8x256xf32>
    %17 = vector.extract_strided_slice %13 {offsets = [0, 0], sizes = [8, 128], strides = [1, 1]} : vector<64x128xf32> to vector<8x128xf32>
    %18 = vector.extract_strided_slice %16 {offsets = [0, 0], sizes = [8, 128], strides = [1, 1]} : vector<8x256xf32> to vector<8x128xf32>
    %19 = arith.addf %17, %18 : vector<8x128xf32>
    %20 = arith.negf %19 : vector<8x128xf32>
    %21 = math.exp %20 : vector<8x128xf32>
    %cst_10 = arith.constant 1.000000e+00 : f32
    %22 = vector.broadcast %cst_10 : f32 to vector<8x128xf32>
    %23 = arith.addf %22, %21 : vector<8x128xf32>
    %24 = arith.divf %22, %23 : vector<8x128xf32>
    %25 = math.tanh %19 : vector<8x128xf32>
    %26 = vector.extract_strided_slice %24 {offsets = [0, 0], sizes = [8, 32], strides = [1, 1]} : vector<8x128xf32> to vector<8x32xf32>
    %27 = vector.extract_strided_slice %24 {offsets = [0, 32], sizes = [8, 32], strides = [1, 1]} : vector<8x128xf32> to vector<8x32xf32>
    %28 = vector.extract_strided_slice %25 {offsets = [0, 64], sizes = [8, 32], strides = [1, 1]} : vector<8x128xf32> to vector<8x32xf32>
    %29 = vector.extract_strided_slice %24 {offsets = [0, 96], sizes = [8, 32], strides = [1, 1]} : vector<8x128xf32> to vector<8x32xf32>
    %30 = arith.mulf %27, %12 : vector<8x32xf32>
    %31 = arith.mulf %26, %28 : vector<8x32xf32>
    %32 = arith.addf %30, %31 : vector<8x32xf32>
    %33 = math.tanh %32 : vector<8x32xf32>
    %34 = arith.mulf %29, %33 : vector<8x32xf32>
    %cst_11 = arith.constant dense<0.000000e+00> : vector<8x256xf32>
    %35 = tpu.matmul %34, %0, %cst_11 {dimension_numbers = #tpu.dot_dimension_numbers<[1], [0], [0], [1], [0, 0, 1, 1], [], []>} : vector<8x32xf32>, vector<32x256xf32>, vector<8x256xf32> -> vector<8x256xf32>
    %36 = vector.broadcast %4 : vector<1x256xf32> to vector<8x256xf32>
    %37 = arith.addf %35, %36 : vector<8x256xf32>
    %38 = vector.extract_strided_slice %37 {offsets = [0, 128], sizes = [8, 128], strides = [1, 1]} : vector<8x256xf32> to vector<8x128xf32>
    %c0_12 = arith.constant 0 : index
    %c0_13 = arith.constant 0 : index
    %39 = vector.load %arg2[%c0_12, %c0_13] : memref<72x128xf32, #tpu.memory_space<vmem>>, vector<8x128xf32>
    tpu.vector_store %arg2[%c0_12, %c0_13], %38 {strides = array<i32>} : memref<72x128xf32, #tpu.memory_space<vmem>>, vector<8x128xf32>,
    %40 = vector.extract_strided_slice %13 {offsets = [8, 0], sizes = [8, 128], strides = [1, 1]} : vector<64x128xf32> to vector<8x128xf32>
    %41 = vector.extract_strided_slice %37 {offsets = [0, 0], sizes = [8, 128], strides = [1, 1]} : vector<8x256xf32> to vector<8x128xf32>
    %42 = arith.addf %40, %41 : vector<8x128xf32>
    %43 = arith.negf %42 : vector<8x128xf32>
    %44 = math.exp %43 : vector<8x128xf32>
    %cst_14 = arith.constant 1.000000e+00 : f32
    %45 = vector.broadcast %cst_14 : f32 to vector<8x128xf32>
    %46 = arith.addf %45, %44 : vector<8x128xf32>
    %47 = arith.divf %45, %46 : vector<8x128xf32>
    %48 = math.tanh %42 : vector<8x128xf32>
    %49 = vector.extract_strided_slice %47 {offsets = [0, 0], sizes = [8, 32], strides = [1, 1]} : vector<8x128xf32> to vector<8x32xf32>
    %50 = vector.extract_strided_slice %47 {offsets = [0, 32], sizes = [8, 32], strides = [1, 1]} : vector<8x128xf32> to vector<8x32xf32>
    %51 = vector.extract_strided_slice %48 {offsets = [0, 64], sizes = [8, 32], strides = [1, 1]} : vector<8x128xf32> to vector<8x32xf32>
    %52 = vector.extract_strided_slice %47 {offsets = [0, 96], sizes = [8, 32], strides = [1, 1]} : vector<8x128xf32> to vector<8x32xf32>
    %53 = arith.mulf %50, %32 : vector<8x32xf32>
    %54 = arith.mulf %49, %51 : vector<8x32xf32>
    %55 = arith.addf %53, %54 : vector<8x32xf32>
    %56 = math.tanh %55 : vector<8x32xf32>
    %57 = arith.mulf %52, %56 : vector<8x32xf32>
    %cst_15 = arith.constant dense<0.000000e+00> : vector<8x256xf32>
    %58 = tpu.matmul %57, %0, %cst_15 {dimension_numbers = #tpu.dot_dimension_numbers<[1], [0], [0], [1], [0, 0, 1, 1], [], []>} : vector<8x32xf32>, vector<32x256xf32>, vector<8x256xf32> -> vector<8x256xf32>
    %59 = vector.broadcast %4 : vector<1x256xf32> to vector<8x256xf32>
    %60 = arith.addf %58, %59 : vector<8x256xf32>
    %61 = vector.extract_strided_slice %60 {offsets = [0, 128], sizes = [8, 128], strides = [1, 1]} : vector<8x256xf32> to vector<8x128xf32>
    %c8 = arith.constant 8 : index
    %c0_16 = arith.constant 0 : index
    %62 = vector.load %arg2[%c8, %c0_16] : memref<72x128xf32, #tpu.memory_space<vmem>>, vector<8x128xf32>
    tpu.vector_store %arg2[%c8, %c0_16], %61 {strides = array<i32>} : memref<72x128xf32, #tpu.memory_space<vmem>>, vector<8x128xf32>,
    %63 = vector.extract_strided_slice %13 {offsets = [16, 0], sizes = [8, 128], strides = [1, 1]} : vector<64x128xf32> to vector<8x128xf32>
    %64 = vector.extract_strided_slice %60 {offsets = [0, 0], sizes = [8, 128], strides = [1, 1]} : vector<8x256xf32> to vector<8x128xf32>
    %65 = arith.addf %63, %64 : vector<8x128xf32>
    %66 = arith.negf %65 : vector<8x128xf32>
    %67 = math.exp %66 : vector<8x128xf32>
    %cst_17 = arith.constant 1.000000e+00 : f32
    %68 = vector.broadcast %cst_17 : f32 to vector<8x128xf32>
    %69 = arith.addf %68, %67 : vector<8x128xf32>
    %70 = arith.divf %68, %69 : vector<8x128xf32>
    %71 = math.tanh %65 : vector<8x128xf32>
    %72 = vector.extract_strided_slice %70 {offsets = [0, 0], sizes = [8, 32], strides = [1, 1]} : vector<8x128xf32> to vector<8x32xf32>
    %73 = vector.extract_strided_slice %70 {offsets = [0, 32], sizes = [8, 32], strides = [1, 1]} : vector<8x128xf32> to vector<8x32xf32>
    %74 = vector.extract_strided_slice %71 {offsets = [0, 64], sizes = [8, 32], strides = [1, 1]} : vector<8x128xf32> to vector<8x32xf32>
    %75 = vector.extract_strided_slice %70 {offsets = [0, 96], sizes = [8, 32], strides = [1, 1]} : vector<8x128xf32> to vector<8x32xf32>
    %76 = arith.mulf %73, %55 : vector<8x32xf32>
    %77 = arith.mulf %72, %74 : vector<8x32xf32>
    %78 = arith.addf %76, %77 : vector<8x32xf32>
    %79 = math.tanh %78 : vector<8x32xf32>
    %80 = arith.mulf %75, %79 : vector<8x32xf32>
    %cst_18 = arith.constant dense<0.000000e+00> : vector<8x256xf32>
    %81 = tpu.matmul %80, %0, %cst_18 {dimension_numbers = #tpu.dot_dimension_numbers<[1], [0], [0], [1], [0, 0, 1, 1], [], []>} : vector<8x32xf32>, vector<32x256xf32>, vector<8x256xf32> -> vector<8x256xf32>
    %82 = vector.broadcast %4 : vector<1x256xf32> to vector<8x256xf32>
    %83 = arith.addf %81, %82 : vector<8x256xf32>
    %84 = vector.extract_strided_slice %83 {offsets = [0, 128], sizes = [8, 128], strides = [1, 1]} : vector<8x256xf32> to vector<8x128xf32>
    %c16 = arith.constant 16 : index
    %c0_19 = arith.constant 0 : index
    %85 = vector.load %arg2[%c16, %c0_19] : memref<72x128xf32, #tpu.memory_space<vmem>>, vector<8x128xf32>
    tpu.vector_store %arg2[%c16, %c0_19], %84 {strides = array<i32>} : memref<72x128xf32, #tpu.memory_space<vmem>>, vector<8x128xf32>,
    %86 = vector.extract_strided_slice %13 {offsets = [24, 0], sizes = [8, 128], strides = [1, 1]} : vector<64x128xf32> to vector<8x128xf32>
    %87 = vector.extract_strided_slice %83 {offsets = [0, 0], sizes = [8, 128], strides = [1, 1]} : vector<8x256xf32> to vector<8x128xf32>
    %88 = arith.addf %86, %87 : vector<8x128xf32>
    %89 = arith.negf %88 : vector<8x128xf32>
    %90 = math.exp %89 : vector<8x128xf32>
    %cst_20 = arith.constant 1.000000e+00 : f32
    %91 = vector.broadcast %cst_20 : f32 to vector<8x128xf32>
    %92 = arith.addf %91, %90 : vector<8x128xf32>
    %93 = arith.divf %91, %92 : vector<8x128xf32>
    %94 = math.tanh %88 : vector<8x128xf32>
    %95 = vector.extract_strided_slice %93 {offsets = [0, 0], sizes = [8, 32], strides = [1, 1]} : vector<8x128xf32> to vector<8x32xf32>
    %96 = vector.extract_strided_slice %93 {offsets = [0, 32], sizes = [8, 32], strides = [1, 1]} : vector<8x128xf32> to vector<8x32xf32>
    %97 = vector.extract_strided_slice %94 {offsets = [0, 64], sizes = [8, 32], strides = [1, 1]} : vector<8x128xf32> to vector<8x32xf32>
    %98 = vector.extract_strided_slice %93 {offsets = [0, 96], sizes = [8, 32], strides = [1, 1]} : vector<8x128xf32> to vector<8x32xf32>
    %99 = arith.mulf %96, %78 : vector<8x32xf32>
    %100 = arith.mulf %95, %97 : vector<8x32xf32>
    %101 = arith.addf %99, %100 : vector<8x32xf32>
    %102 = math.tanh %101 : vector<8x32xf32>
    %103 = arith.mulf %98, %102 : vector<8x32xf32>
    %cst_21 = arith.constant dense<0.000000e+00> : vector<8x256xf32>
    %104 = tpu.matmul %103, %0, %cst_21 {dimension_numbers = #tpu.dot_dimension_numbers<[1], [0], [0], [1], [0, 0, 1, 1], [], []>} : vector<8x32xf32>, vector<32x256xf32>, vector<8x256xf32> -> vector<8x256xf32>
    %105 = vector.broadcast %4 : vector<1x256xf32> to vector<8x256xf32>
    %106 = arith.addf %104, %105 : vector<8x256xf32>
    %107 = vector.extract_strided_slice %106 {offsets = [0, 128], sizes = [8, 128], strides = [1, 1]} : vector<8x256xf32> to vector<8x128xf32>
    %c24 = arith.constant 24 : index
    %c0_22 = arith.constant 0 : index
    %108 = vector.load %arg2[%c24, %c0_22] : memref<72x128xf32, #tpu.memory_space<vmem>>, vector<8x128xf32>
    tpu.vector_store %arg2[%c24, %c0_22], %107 {strides = array<i32>} : memref<72x128xf32, #tpu.memory_space<vmem>>, vector<8x128xf32>,
    %109 = vector.extract_strided_slice %13 {offsets = [32, 0], sizes = [8, 128], strides = [1, 1]} : vector<64x128xf32> to vector<8x128xf32>
    %110 = vector.extract_strided_slice %106 {offsets = [0, 0], sizes = [8, 128], strides = [1, 1]} : vector<8x256xf32> to vector<8x128xf32>
    %111 = arith.addf %109, %110 : vector<8x128xf32>
    %112 = arith.negf %111 : vector<8x128xf32>
    %113 = math.exp %112 : vector<8x128xf32>
    %cst_23 = arith.constant 1.000000e+00 : f32
    %114 = vector.broadcast %cst_23 : f32 to vector<8x128xf32>
    %115 = arith.addf %114, %113 : vector<8x128xf32>
    %116 = arith.divf %114, %115 : vector<8x128xf32>
    %117 = math.tanh %111 : vector<8x128xf32>
    %118 = vector.extract_strided_slice %116 {offsets = [0, 0], sizes = [8, 32], strides = [1, 1]} : vector<8x128xf32> to vector<8x32xf32>
    %119 = vector.extract_strided_slice %116 {offsets = [0, 32], sizes = [8, 32], strides = [1, 1]} : vector<8x128xf32> to vector<8x32xf32>
    %120 = vector.extract_strided_slice %117 {offsets = [0, 64], sizes = [8, 32], strides = [1, 1]} : vector<8x128xf32> to vector<8x32xf32>
    %121 = vector.extract_strided_slice %116 {offsets = [0, 96], sizes = [8, 32], strides = [1, 1]} : vector<8x128xf32> to vector<8x32xf32>
    %122 = arith.mulf %119, %101 : vector<8x32xf32>
    %123 = arith.mulf %118, %120 : vector<8x32xf32>
    %124 = arith.addf %122, %123 : vector<8x32xf32>
    %125 = math.tanh %124 : vector<8x32xf32>
    %126 = arith.mulf %121, %125 : vector<8x32xf32>
    %cst_24 = arith.constant dense<0.000000e+00> : vector<8x256xf32>
    %127 = tpu.matmul %126, %0, %cst_24 {dimension_numbers = #tpu.dot_dimension_numbers<[1], [0], [0], [1], [0, 0, 1, 1], [], []>} : vector<8x32xf32>, vector<32x256xf32>, vector<8x256xf32> -> vector<8x256xf32>
    %128 = vector.broadcast %4 : vector<1x256xf32> to vector<8x256xf32>
    %129 = arith.addf %127, %128 : vector<8x256xf32>
    %130 = vector.extract_strided_slice %129 {offsets = [0, 128], sizes = [8, 128], strides = [1, 1]} : vector<8x256xf32> to vector<8x128xf32>
    %c32_25 = arith.constant 32 : index
    %c0_26 = arith.constant 0 : index
    %131 = vector.load %arg2[%c32_25, %c0_26] : memref<72x128xf32, #tpu.memory_space<vmem>>, vector<8x128xf32>
    tpu.vector_store %arg2[%c32_25, %c0_26], %130 {strides = array<i32>} : memref<72x128xf32, #tpu.memory_space<vmem>>, vector<8x128xf32>,
    %132 = vector.extract_strided_slice %13 {offsets = [40, 0], sizes = [8, 128], strides = [1, 1]} : vector<64x128xf32> to vector<8x128xf32>
    %133 = vector.extract_strided_slice %129 {offsets = [0, 0], sizes = [8, 128], strides = [1, 1]} : vector<8x256xf32> to vector<8x128xf32>
    %134 = arith.addf %132, %133 : vector<8x128xf32>
    %135 = arith.negf %134 : vector<8x128xf32>
    %136 = math.exp %135 : vector<8x128xf32>
    %cst_27 = arith.constant 1.000000e+00 : f32
    %137 = vector.broadcast %cst_27 : f32 to vector<8x128xf32>
    %138 = arith.addf %137, %136 : vector<8x128xf32>
    %139 = arith.divf %137, %138 : vector<8x128xf32>
    %140 = math.tanh %134 : vector<8x128xf32>
    %141 = vector.extract_strided_slice %139 {offsets = [0, 0], sizes = [8, 32], strides = [1, 1]} : vector<8x128xf32> to vector<8x32xf32>
    %142 = vector.extract_strided_slice %139 {offsets = [0, 32], sizes = [8, 32], strides = [1, 1]} : vector<8x128xf32> to vector<8x32xf32>
    %143 = vector.extract_strided_slice %140 {offsets = [0, 64], sizes = [8, 32], strides = [1, 1]} : vector<8x128xf32> to vector<8x32xf32>
    %144 = vector.extract_strided_slice %139 {offsets = [0, 96], sizes = [8, 32], strides = [1, 1]} : vector<8x128xf32> to vector<8x32xf32>
    %145 = arith.mulf %142, %124 : vector<8x32xf32>
    %146 = arith.mulf %141, %143 : vector<8x32xf32>
    %147 = arith.addf %145, %146 : vector<8x32xf32>
    %148 = math.tanh %147 : vector<8x32xf32>
    %149 = arith.mulf %144, %148 : vector<8x32xf32>
    %cst_28 = arith.constant dense<0.000000e+00> : vector<8x256xf32>
    %150 = tpu.matmul %149, %0, %cst_28 {dimension_numbers = #tpu.dot_dimension_numbers<[1], [0], [0], [1], [0, 0, 1, 1], [], []>} : vector<8x32xf32>, vector<32x256xf32>, vector<8x256xf32> -> vector<8x256xf32>
    %151 = vector.broadcast %4 : vector<1x256xf32> to vector<8x256xf32>
    %152 = arith.addf %150, %151 : vector<8x256xf32>
    %153 = vector.extract_strided_slice %152 {offsets = [0, 128], sizes = [8, 128], strides = [1, 1]} : vector<8x256xf32> to vector<8x128xf32>
    %c40 = arith.constant 40 : index
    %c0_29 = arith.constant 0 : index
    %154 = vector.load %arg2[%c40, %c0_29] : memref<72x128xf32, #tpu.memory_space<vmem>>, vector<8x128xf32>
    tpu.vector_store %arg2[%c40, %c0_29], %153 {strides = array<i32>} : memref<72x128xf32, #tpu.memory_space<vmem>>, vector<8x128xf32>,
    %155 = vector.extract_strided_slice %13 {offsets = [48, 0], sizes = [8, 128], strides = [1, 1]} : vector<64x128xf32> to vector<8x128xf32>
    %156 = vector.extract_strided_slice %152 {offsets = [0, 0], sizes = [8, 128], strides = [1, 1]} : vector<8x256xf32> to vector<8x128xf32>
    %157 = arith.addf %155, %156 : vector<8x128xf32>
    %158 = arith.negf %157 : vector<8x128xf32>
    %159 = math.exp %158 : vector<8x128xf32>
    %cst_30 = arith.constant 1.000000e+00 : f32
    %160 = vector.broadcast %cst_30 : f32 to vector<8x128xf32>
    %161 = arith.addf %160, %159 : vector<8x128xf32>
    %162 = arith.divf %160, %161 : vector<8x128xf32>
    %163 = math.tanh %157 : vector<8x128xf32>
    %164 = vector.extract_strided_slice %162 {offsets = [0, 0], sizes = [8, 32], strides = [1, 1]} : vector<8x128xf32> to vector<8x32xf32>
    %165 = vector.extract_strided_slice %162 {offsets = [0, 32], sizes = [8, 32], strides = [1, 1]} : vector<8x128xf32> to vector<8x32xf32>
    %166 = vector.extract_strided_slice %163 {offsets = [0, 64], sizes = [8, 32], strides = [1, 1]} : vector<8x128xf32> to vector<8x32xf32>
    %167 = vector.extract_strided_slice %162 {offsets = [0, 96], sizes = [8, 32], strides = [1, 1]} : vector<8x128xf32> to vector<8x32xf32>
    %168 = arith.mulf %165, %147 : vector<8x32xf32>
    %169 = arith.mulf %164, %166 : vector<8x32xf32>
    %170 = arith.addf %168, %169 : vector<8x32xf32>
    %171 = math.tanh %170 : vector<8x32xf32>
    %172 = arith.mulf %167, %171 : vector<8x32xf32>
    %cst_31 = arith.constant dense<0.000000e+00> : vector<8x256xf32>
    %173 = tpu.matmul %172, %0, %cst_31 {dimension_numbers = #tpu.dot_dimension_numbers<[1], [0], [0], [1], [0, 0, 1, 1], [], []>} : vector<8x32xf32>, vector<32x256xf32>, vector<8x256xf32> -> vector<8x256xf32>
    %174 = vector.broadcast %4 : vector<1x256xf32> to vector<8x256xf32>
    %175 = arith.addf %173, %174 : vector<8x256xf32>
    %176 = vector.extract_strided_slice %175 {offsets = [0, 128], sizes = [8, 128], strides = [1, 1]} : vector<8x256xf32> to vector<8x128xf32>
    %c48 = arith.constant 48 : index
    %c0_32 = arith.constant 0 : index
    %177 = vector.load %arg2[%c48, %c0_32] : memref<72x128xf32, #tpu.memory_space<vmem>>, vector<8x128xf32>
    tpu.vector_store %arg2[%c48, %c0_32], %176 {strides = array<i32>} : memref<72x128xf32, #tpu.memory_space<vmem>>, vector<8x128xf32>,
    %178 = vector.extract_strided_slice %13 {offsets = [56, 0], sizes = [8, 128], strides = [1, 1]} : vector<64x128xf32> to vector<8x128xf32>
    %179 = vector.extract_strided_slice %175 {offsets = [0, 0], sizes = [8, 128], strides = [1, 1]} : vector<8x256xf32> to vector<8x128xf32>
    %180 = arith.addf %178, %179 : vector<8x128xf32>
    %181 = arith.negf %180 : vector<8x128xf32>
    %182 = math.exp %181 : vector<8x128xf32>
    %cst_33 = arith.constant 1.000000e+00 : f32
    %183 = vector.broadcast %cst_33 : f32 to vector<8x128xf32>
    %184 = arith.addf %183, %182 : vector<8x128xf32>
    %185 = arith.divf %183, %184 : vector<8x128xf32>
    %186 = math.tanh %180 : vector<8x128xf32>
    %187 = vector.extract_strided_slice %185 {offsets = [0, 0], sizes = [8, 32], strides = [1, 1]} : vector<8x128xf32> to vector<8x32xf32>
    %188 = vector.extract_strided_slice %185 {offsets = [0, 32], sizes = [8, 32], strides = [1, 1]} : vector<8x128xf32> to vector<8x32xf32>
    %189 = vector.extract_strided_slice %186 {offsets = [0, 64], sizes = [8, 32], strides = [1, 1]} : vector<8x128xf32> to vector<8x32xf32>
    %190 = vector.extract_strided_slice %185 {offsets = [0, 96], sizes = [8, 32], strides = [1, 1]} : vector<8x128xf32> to vector<8x32xf32>
    %191 = arith.mulf %188, %170 : vector<8x32xf32>
    %192 = arith.mulf %187, %189 : vector<8x32xf32>
    %193 = arith.addf %191, %192 : vector<8x32xf32>
    %194 = math.tanh %193 : vector<8x32xf32>
    %195 = arith.mulf %190, %194 : vector<8x32xf32>
    %cst_34 = arith.constant dense<0.000000e+00> : vector<8x256xf32>
    %196 = tpu.matmul %195, %0, %cst_34 {dimension_numbers = #tpu.dot_dimension_numbers<[1], [0], [0], [1], [0, 0, 1, 1], [], []>} : vector<8x32xf32>, vector<32x256xf32>, vector<8x256xf32> -> vector<8x256xf32>
    %197 = vector.broadcast %4 : vector<1x256xf32> to vector<8x256xf32>
    %198 = arith.addf %196, %197 : vector<8x256xf32>
    %199 = vector.extract_strided_slice %198 {offsets = [0, 128], sizes = [8, 128], strides = [1, 1]} : vector<8x256xf32> to vector<8x128xf32>
    %c56 = arith.constant 56 : index
    %c0_35 = arith.constant 0 : index
    %200 = vector.load %arg2[%c56, %c0_35] : memref<72x128xf32, #tpu.memory_space<vmem>>, vector<8x128xf32>
    tpu.vector_store %arg2[%c56, %c0_35], %199 {strides = array<i32>} : memref<72x128xf32, #tpu.memory_space<vmem>>, vector<8x128xf32>,
    %cst_36 = arith.constant 0.000000e+00 : f32
    %201 = vector.broadcast %cst_36 : f32 to vector<8x64xf32>
    %202 = tpu.concatenate %195, %193, %201 in 1 : vector<8x32xf32>, vector<8x32xf32>, vector<8x64xf32> -> vector<8x128xf32>
    %c64_37 = arith.constant 64 : index
    %c0_38 = arith.constant 0 : index
    %203 = vector.load %arg2[%c64_37, %c0_38] : memref<72x128xf32, #tpu.memory_space<vmem>>, vector<8x128xf32>
    tpu.vector_store %arg2[%c64_37, %c0_38], %202 {strides = array<i32>} : memref<72x128xf32, #tpu.memory_space<vmem>>, vector<8x128xf32>,
    return
  }
}

</mosaic_0001>

<bundles_post_ra>
// kernel: decoder_forward.1
= control target key start
LH: loop header
LB: loop body
LE: loop exit
PB: predicated region body
PF: predicated region fallthrough
CT: control target
= control target key end

     0   :  { %7 = vsyncpa [#allocation3], 0  ;;  %s1433_s9 = smov [#allocation2]   ;;  %s1660_s0 = inlined_call_operand.vmem [shape: f32[72,40], index: 0, kind: input, shape index: {}]   ;;  %s1661_s1 = inlined_call_operand.hbm [shape: f32[128,256], index: 1, kind: input, shape index: {}]   ;;  %s1662_s2 = inlined_call_operand.vmem [shape: f32[72,128], index: 2, kind: output, shape index: {}]  }
   0x1   :  { %s15_s10 = sshll.u32 %s1433_s9, 4  ;;  %s1409_s13 = scalar_lea.hbm %s1661_s1, 4096  ;;  %s16_s10 = int_to_ptr.vmem [resolvable:$true] %s15_s10 }
   0x2   :  { %p1410_p0 = scmp.ne.s32.totalorder %s1661_s1, %s1409_s13  ;;  %p1413_p1 = scmp.lt.u32.totalorder %s1409_s13, %s1661_s1 }
   0x4   :  { %p1415_p2 = pnand %p1413_p1, %p1410_p0 }
   0x6   :  { %1418 = shalt.err (!%p1415_p2)
}
   0x7   :  { %s1419_s18 = scalar_lea.vmem %s16_s10, 4096  ;;  %p1424_p4 = scmp.lt.s32.totalorder %s16_s10, %s16_s10 }
   0x8   :  { %p1420_p3 = scmp.ne.s32.totalorder %s16_s10, %s1419_s18  ;;  %p1425_p5 = scmp.lt.s32.totalorder %s1419_s18, %s1419_s18 }
   0xa   :  { %p1426_p6 = por %p1425_p5, %p1424_p4 }
   0xc   :  { %p1427_p7 = pnand %p1426_p6, %p1420_p3 }
   0xe   :  { %1430 = shalt.err (!%p1427_p7)
}
   0xf   :  { %s1434_s19 = smov 256   ;;  %s1435_s20 = smov 16  }
  0x10   :  { %21 = dma.hbm_to_vmem [thread:$0]  %s1661_s1, 4096, %s16_s10, [#allocation3], %s1434_s19, %s1434_s19, %s1435_s20  }
  0x11   :  { %1431 = dma.done.wait [#allocation3], 4096  }
  0x12   :  { %1432 = vsyncadd [#allocation3], 4294963200  ;;  %v1436_v0 = vmov 0.0|0.0   ;;  %vm1437_vm0 = vmmov 0   ;;  %v1438_v1 = vmov 0.0   ;;  %v38_v2 = vld [vmem:[#allocation2 + $0x90] sm:$0xff]  ;;  %v260_v38 = vlaneseq }
  0x13   :  { %1249 = vmatprep.subr.bf16.mxu0 %v1436_v0  ;;  %1224 = vmatprep.mubr.msk.f32.mxu0 %vm1437_vm0, %v1438_v1  ;;  %v39_v3 = vld [vmem:[#allocation2 + $0xa0] sm:$0xff]  ;;  %v40_v4 = vld [vmem:[#allocation2 + $0xb0] sm:$0xff]  ;;  %vm55_vm1 = vcmask 326656   ;;  %v26_v13 = vld [vmem:[#allocation2 + $0x8] sm:$0xff]  ;;  %vm270_vm2 = vcmask 261120   ;;  %s1439_s28 = smov 64  }
  0x14   :  { %v1250_v5 = vpack.c.bf16 %v39_v3, %v38_v2  ;;  %v41_v6 = vld [vmem:[#allocation2 + $0xc0] sm:$0xff]  ;;  %v42_v8 = vld [vmem:[#allocation2 + $0xd0] sm:$0xff]  ;;  %v28_v14 = vld [vmem:[#allocation2 + $0x18] sm:$0xff]  ;;  %v261_v39 = vshrl.u32 %v260_v38, 7  ;;  %s1440_s29 = smov 32   ;;  %vm1161_vm3 = vcmask 523264  }
  0x15   :  { %v1253_v7 = vpack.c.bf16 %v41_v6, %v40_v4  ;;  %v54_v9 = vld [vmem:[%s1660_s0 + $0x40] sm:$0xff]  ;;  %v34_v11 = vld [vmem:[#allocation2 + $0x50] sm:$0xff]  ;;  %v1475_v16 = vpack.c.bf16 %v28_v14, %v26_v13  ;;  %v30_v22 = vld [vmem:[#allocation2 + $0x28] sm:$0xff] }
  0x16   :  { %1251 = vmatpush3.bf16.msra.mxu0 %v1250_v5  ;;  %v33_v10 = vld [vmem:[#allocation2 + $0x40] sm:$0xff]  ;;  %v27_v17 = vld [vmem:[#allocation2 + $0x10] sm:$0xff]  ;;  %v32_v23 = vld [vmem:[#allocation2 + $0x38] sm:$0xff]  ;;  %v262_v40 = vsub.s32 0, %v261_v39  ;;  %v266_v61 = vsub.s32 1, %v261_v39 }
  0x17   :  { %1252 = vmatprep.subr.bf16.mxu0 %v1436_v0  ;;  %v1255_v12 = vpack.c.bf16 %v34_v11, %v33_v10  ;;  %v25_v15 = vld [vmem:[#allocation2] sm:$0xff]  ;;  %v36_v19 = vld [vmem:[#allocation2 + $0x70] sm:$0xff]  ;;  %v1480_v25 = vpack.c.bf16 %v32_v23, %v30_v22  ;;  %v47_v30 = vld [vmem:[%s1660_s0 + $0x8] sm:$0xff] }
  0x18   :  { %v35_v18 = vld [vmem:[#allocation2 + $0x60] sm:$0xff]  ;;  %v1477_v20 = vpack.c.bf16 %v27_v17, %v25_v15  ;;  %v31_v26 = vld [vmem:[#allocation2 + $0x30] sm:$0xff]  ;;  %v49_v17 = vld [vmem:[%s1660_s0 + $0x18] sm:$0xff] }
  0x19   :  { %1256 = vmatprep.subr.bf16.mxu1 %v1255_v12  ;;  %v1259_v21 = vpack.c.bf16 %v36_v19, %v35_v18  ;;  %v29_v24 = vld [vmem:[#allocation2 + $0x20] sm:$0xff]  ;;  %v45_v41 = vld [vmem:[#allocation2 + $0xf0] ss:$8 sm:$0x3]  ;;  %v51_v19 = vld [vmem:[%s1660_s0 + $0x28] sm:$0xff] }
  0x1a   :  { %1254 = vmatpush3.bf16.msra.mxu0 %v1253_v7  ;;  %1258 = vmatpush3.bf16.msra.mxu1 %v1255_v12  ;;  %v46_v27 = vld [vmem:[%s1660_s0] sm:$0xff]  ;;  %v1486_v28 = vpack.c.bf16 %v31_v26, %v29_v24  ;;  %v1507_v42 = vrot.slane %v45_v41, %v262_v40  ;;  %v1520_v62 = vrot.slane %v45_v41, %v266_v61  ;;  %v48_v15 = vld [vmem:[%s1660_s0 + $0x10] sm:$0xff]  ;;  %v53_v22 = vld [vmem:[%s1660_s0 + $0x38] sm:$0xff] }
  0x1b   :  { %1222 = vmatprep.subr.mxu0 %v1438_v1  ;;  %1260 = vmatprep.subr.bf16.mxu1 %v1259_v21  ;;  %v37_v29 = vld [vmem:[#allocation2 + $0x80] sm:$0xff] }
  0x1c   :  { %1237 = vmatprep.mubr.msk.f32.mxu1 %vm55_vm1, %v46_v27  ;;  %v43_v31 = vld [vmem:[#allocation2 + $0xe0] ss:$0 sm:$0xff] }
  0x1d   :  { %v50_v18 = vld [vmem:[%s1660_s0 + $0x20] sm:$0xff] }
  0x1e   :  { %1223 = vmatpush3.msra.mxu0 %v42_v8  ;;  %1262 = vmatpush3.bf16.msra.mxu1 %v1259_v21  ;;  %v52_v21 = vld [vmem:[%s1660_s0 + $0x30] sm:$0xff] }
  0x1f   :  { %1225 = vmatmul.mubr.msk.f32.vlgmr.msra.gmra.mrb[0].mxu0 %vm55_vm1, %v54_v9  ;;  %1264 = vmatprep.subr.bf16.mxu0 %v1475_v16 }
  0x20   :  { %338 = vmatprep.mubr.f32.mxu0 %v1438_v1  ;;  %1266 = vmatpush1.bf16.msra.mxu0 %v1477_v20 }
  0x21   :  { %1268 = vmatprep.subr.bf16.mxu0 %v1480_v25  ;;  %1235 = vmatprep.subr.mxu1 %v37_v29 }
  0x22   :  { %1236 = vmatpush3.msra.mxu1 %v37_v29 }
  0x23   :  { %1238 = vmatmul.mubr.msk.f32.vlgmr.msra.gmra.mrb[0].mxu1 %vm55_vm1, %v47_v30  ;;  %1280 = vmatprep.subr.bf16.mxu1 %v1475_v16 }
  0x24   :  { %1270 = vmatpush1.bf16.msra.mxu0 %v1486_v28  ;;  %1282 = vmatpush1.bf16.msra.mxu1 %v1477_v20 }
  0x25   :  { %1272 = vmatprep.subr.bf16.mxu0 %v1475_v16  ;;  %1284 = vmatprep.subr.bf16.mxu1 %v1480_v25 }
  0x26   :  { %1240 = vmatprep.mubr.msk.f32.mxu1 %vm55_vm1, %v48_v15 }
  0x27   :  { %1241 = vmatmul.mubr.msk.f32.gmra.mrb[2].mxu1 %vm55_vm1, %v49_v17 }
  0x28   :  { %1286 = vmatpush1.bf16.msra.mxu1 %v1486_v28  ;;  %1243 = vmatprep.mubr.msk.f32.mxu1 %vm55_vm1, %v50_v18 }
  0x29   :  { %1296 = vmatprep.subr.bf16.mxu1 %v1475_v16 }
  0x2b   :  { %1244 = vmatmul.mubr.msk.f32.gmra.mrb[4].mxu1 %vm55_vm1, %v51_v19 }
  0x2c   :  { %1246 = vmatprep.mubr.msk.f32.mxu1 %vm55_vm1, %v52_v21 }
  0x2f   :  { %1247 = vmatmul.mubr.msk.f32.gmra.mrb[6].mxu1 %vm55_vm1, %v53_v22 }
  0x30   :  { %540 = vmatprep.mubr.f32.mxu1 %v1438_v1 }
  0xf2   :  { %v125_v32 = vpop.f32.mrb[0].mxu0 }
  0xf3   :  { %v126_v33 = vadd.f32 %v125_v32, %v43_v31  ;;  %v1226_v34 = vpop.f32.mrb[1].mxu0 }
  0xf5   :  { %1343 = vtanh.f32 %v126_v33 }
  0xf6   :  { %v1239_v36 = vpop.f32.mrb[0].mxu1 }
  0xf7   :  { %v220_v37 = vpop.f32.mrb[1].mxu1 }
  0xfa   :  { %v1242_v27 = vpop.f32.mrb[2].mxu1 }
  0xfb   :  { %v230_v29 = vpop.f32.mrb[3].mxu1 }
  0xfe   :  { %v1556_v30 = vpop.f32.mrb[4].mxu1 }
  0xff   :  { %v1344_v35 = vpop.eup %1343  ;;  %v1558_v31 = vpop.f32.mrb[5].mxu1 }
 0x100   :  { %1178 = vmatmul.mubr.msk.f32.vlgmr.msra.gmra.mrb[2].mxu0 %vm270_vm2, %v1344_v35 }
 0x101   :  { %1274 = vmatpush1.bf16.msra.mxu0 %v1477_v20  ;;  %438 = vmatprep.mubr.f32.mxu0 %v1438_v1 }
 0x102   :  { %1276 = vmatprep.subr.bf16.mxu0 %v1480_v25  ;;  %v1560_v32 = vpop.f32.mrb[6].mxu1 }
 0x103   :  { %v1562_v33 = vpop.f32.mrb[7].mxu1 }
 0x105   :  { %1278 = vmatpush1.bf16.msra.mxu0 %v1486_v28 }
 0x106   :  { %1288 = vmatprep.subr.bf16.mxu0 %v1475_v16 }
 0x1d3   :  { %v340_v43 = vpop.f32.mrb[2].mxu0 }
 0x1d4   :  { %v341_v44 = vadd.f32 %v340_v43, %v1507_v42  ;;  %v342_v45 = vpop.f32.mrb[3].mxu0 }
 0x1d6   :  { %v344_v46 = vadd.f32 %v341_v44, %v220_v37 }
 0x1d8   :  { %1345 = vtanh.f32 %v344_v46  ;;  %v1179_v48 = vmul.f32 -1.442695, %v344_v46 }
 0x1da   :  { %1347 = vpow2.f32 %v1179_v48 }
 0x1e2   :  { %v1346_v47 = vpop.eup %1345 }
 0x1e3   :  { %354 = vrot.lane.b32.xlu0 %v1346_v47, %s1439_s28 }
 0x1e4   :  { %v1348_v49 = vpop.eup %1347 }
 0x1e5   :  { %v348_v50 = vadd.f32 1.0, %v1348_v49 }
 0x1e7   :  { %1349 = vrcp.f32 %v348_v50 }
 0x1f1   :  { %v1350_v51 = vpop.eup %1349 }
 0x1f2   :  { %v352_v54 = vmul.f32 %v1350_v51, %v1344_v35 }
 0x255   :  { %v355_v52 = vpop.permute.xlu0 %354 }
 0x256   :  { %v357_v53 = vmul.f32 %v1350_v51, %v355_v52 }
 0x258   :  { %359 = vrot.lane.b32.xlu0 %v357_v53, %s1440_s29 }
 0x2ca   :  { %v360_v55 = vpop.permute.xlu0 %359 }
 0x2cb   :  { %v362_v56 = vadd.f32 %v360_v55, %v352_v54 }
 0x2cd   :  { %1351 = vtanh.f32 %v362_v56 }
 0x2d7   :  { %v1352_v57 = vpop.eup %1351 }
 0x2d8   :  { %365 = vrot.lane.b32.xlu1 %v1352_v57, %s1439_s28 }
 0x34a   :  { %v366_v58 = vpop.permute.xlu1 %365 }
 0x34b   :  { %v368_v59 = vmul.f32 %v1350_v51, %v366_v58 }
 0x34d   :  { %370 = vrot.lane.b32.xlu1 %v368_v59, %s1440_s29 }
 0x3bf   :  { %v371_v60 = vpop.permute.xlu1 %370 }
 0x3c0   :  { %1180 = vmatmul.mubr.msk.f32.vlgmr.msra.gmra.mrb[4].mxu0 %vm270_vm2, %v371_v60 }
 0x3c1   :  { %1290 = vmatpush1.bf16.msra.mxu0 %v1477_v20  ;;  %642 = vmatprep.mubr.f32.mxu0 %v1438_v1 }
 0x3c2   :  { %1292 = vmatprep.subr.bf16.mxu0 %v1480_v25 }
 0x3c5   :  { %1294 = vmatpush1.bf16.msra.mxu0 %v1486_v28 }
 0x3c6   :  { %1304 = vmatprep.subr.bf16.mxu0 %v1475_v16 }
 0x493   :  { %v440_v63 = vpop.f32.mrb[4].mxu0 }
 0x494   :  { %v441_v0 = vadd.f32 %v440_v63, %v1507_v42  ;;  %v442_v2 = vpop.f32.mrb[5].mxu0 }
 0x495   :  { %v443_v3 = vadd.f32 %v442_v2, %v1520_v62 }
 0x496   :  { %v446_v4 = vadd.f32 %v1239_v36, %v441_v0 }
 0x497   :  { %445 = vst [vmem:[%s1662_s2] sm:$0xff] %v443_v3 }
 0x498   :  { %1353 = vtanh.f32 %v446_v4  ;;  %v1181_v6 = vmul.f32 -1.442695, %v446_v4 }
 0x49a   :  { %1355 = vpow2.f32 %v1181_v6 }
 0x4a2   :  { %v1354_v5 = vpop.eup %1353 }
 0x4a3   :  { %456 = vrot.lane.b32.xlu0 %v1354_v5, %s1439_s28 }
 0x4a4   :  { %v1356_v7 = vpop.eup %1355 }
 0x4a5   :  { %v450_v8 = vadd.f32 1.0, %v1356_v7 }
 0x4a7   :  { %1357 = vrcp.f32 %v450_v8 }
 0x4b1   :  { %v1358_v9 = vpop.eup %1357 }
 0x4b2   :  { %v454_v12 = vmul.f32 %v1358_v9, %v362_v56 }
 0x515   :  { %v457_v10 = vpop.permute.xlu0 %456 }
 0x516   :  { %v459_v11 = vmul.f32 %v1358_v9, %v457_v10 }
 0x518   :  { %461 = vrot.lane.b32.xlu1 %v459_v11, %s1440_s29 }
 0x58a   :  { %v462_v13 = vpop.permute.xlu1 %461 }
 0x58b   :  { %v464_v14 = vadd.f32 %v462_v13, %v454_v12 }
 0x58d   :  { %1359 = vtanh.f32 %v464_v14 }
 0x597   :  { %v1360_v23 = vpop.eup %1359 }
 0x598   :  { %467 = vrot.lane.b32.xlu0 %v1360_v23, %s1439_s28 }
 0x60a   :  { %v468_v24 = vpop.permute.xlu0 %467 }
 0x60b   :  { %v470_v26 = vmul.f32 %v1358_v9, %v468_v24 }
 0x60d   :  { %472 = vrot.lane.b32.xlu1 %v470_v26, %s1440_s29 }
 0x67f   :  { %v473_v34 = vpop.permute.xlu1 %472 }
 0x680   :  { %1182 = vmatmul.mubr.msk.f32.vlgmr.msra.gmra.mrb[8].mxu1 %vm270_vm2, %v473_v34 }
 0x681   :  { %1298 = vmatpush1.bf16.msra.mxu1 %v1477_v20  ;;  %744 = vmatprep.mubr.f32.mxu1 %v1438_v1 }
 0x682   :  { %1300 = vmatprep.subr.bf16.mxu1 %v1480_v25 }
 0x685   :  { %1302 = vmatpush1.bf16.msra.mxu1 %v1486_v28 }
 0x686   :  { %1312 = vmatprep.subr.bf16.mxu1 %v1475_v16 }
 0x753   :  { %v542_v35 = vpop.f32.mrb[8].mxu1 }
 0x754   :  { %v543_v36 = vadd.f32 %v542_v35, %v1507_v42  ;;  %v544_v37 = vpop.f32.mrb[9].mxu1 }
 0x755   :  { %v545_v38 = vadd.f32 %v544_v37, %v1520_v62 }
 0x756   :  { %v548_v39 = vadd.f32 %v543_v36, %v230_v29 }
 0x757   :  { %547 = vst [vmem:[%s1662_s2 + $0x8] sm:$0xff] %v545_v38 }
 0x758   :  { %1361 = vtanh.f32 %v548_v39  ;;  %v1183_v41 = vmul.f32 -1.442695, %v548_v39 }
 0x75a   :  { %1363 = vpow2.f32 %v1183_v41 }
 0x762   :  { %v1362_v40 = vpop.eup %1361 }
 0x763   :  { %558 = vrot.lane.b32.xlu0 %v1362_v40, %s1439_s28 }
 0x764   :  { %v1364_v43 = vpop.eup %1363 }
 0x765   :  { %v552_v44 = vadd.f32 1.0, %v1364_v43 }
 0x767   :  { %1365 = vrcp.f32 %v552_v44 }
 0x771   :  { %v1366_v45 = vpop.eup %1365 }
 0x772   :  { %v556_v48 = vmul.f32 %v1366_v45, %v464_v14 }
 0x7d5   :  { %v559_v46 = vpop.permute.xlu0 %558 }
 0x7d6   :  { %v561_v47 = vmul.f32 %v1366_v45, %v559_v46 }
 0x7d8   :  { %563 = vrot.lane.b32.xlu1 %v561_v47, %s1440_s29 }
 0x84a   :  { %v564_v49 = vpop.permute.xlu1 %563 }
 0x84b   :  { %v566_v50 = vadd.f32 %v564_v49, %v556_v48 }
 0x84d   :  { %1367 = vtanh.f32 %v566_v50 }
 0x857   :  { %v1368_v51 = vpop.eup %1367 }
 0x858   :  { %569 = vrot.lane.b32.xlu0 %v1368_v51, %s1439_s28 }
 0x8ca   :  { %v570_v52 = vpop.permute.xlu0 %569 }
 0x8cb   :  { %v572_v53 = vmul.f32 %v1366_v45, %v570_v52 }
 0x8cd   :  { %574 = vrot.lane.b32.xlu1 %v572_v53, %s1440_s29 }
 0x93f   :  { %v575_v54 = vpop.permute.xlu1 %574 }
 0x940   :  { %1184 = vmatmul.mubr.msk.f32.vlgmr.msra.gmra.mrb[6].mxu0 %vm270_vm2, %v575_v54 }
 0x941   :  { %1306 = vmatpush1.bf16.msra.mxu0 %v1477_v20  ;;  %846 = vmatprep.mubr.f32.mxu0 %v1438_v1 }
 0x942   :  { %1308 = vmatprep.subr.bf16.mxu0 %v1480_v25 }
 0x945   :  { %1310 = vmatpush1.bf16.msra.mxu0 %v1486_v28 }
 0x946   :  { %1320 = vmatprep.subr.bf16.mxu0 %v1475_v16 }
 0xa13   :  { %v644_v55 = vpop.f32.mrb[6].mxu0 }
 0xa14   :  { %v645_v56 = vadd.f32 %v644_v55, %v1507_v42  ;;  %v646_v57 = vpop.f32.mrb[7].mxu0 }
 0xa15   :  { %v647_v58 = vadd.f32 %v646_v57, %v1520_v62 }
 0xa16   :  { %v650_v59 = vadd.f32 %v1242_v27, %v645_v56 }
 0xa17   :  { %649 = vst [vmem:[%s1662_s2 + $0x10] sm:$0xff] %v647_v58 }
 0xa18   :  { %1369 = vtanh.f32 %v650_v59  ;;  %v1185_v61 = vmul.f32 -1.442695, %v650_v59 }
 0xa1a   :  { %1371 = vpow2.f32 %v1185_v61 }
 0xa22   :  { %v1370_v60 = vpop.eup %1369 }
 0xa23   :  { %660 = vrot.lane.b32.xlu0 %v1370_v60, %s1439_s28 }
 0xa24   :  { %v1372_v63 = vpop.eup %1371 }
 0xa25   :  { %v654_v0 = vadd.f32 1.0, %v1372_v63 }
 0xa27   :  { %1373 = vrcp.f32 %v654_v0 }
 0xa31   :  { %v1374_v2 = vpop.eup %1373 }
 0xa32   :  { %v658_v5 = vmul.f32 %v1374_v2, %v566_v50 }
 0xa95   :  { %v661_v3 = vpop.permute.xlu0 %660 }
 0xa96   :  { %v663_v4 = vmul.f32 %v1374_v2, %v661_v3 }
 0xa98   :  { %665 = vrot.lane.b32.xlu1 %v663_v4, %s1440_s29 }
 0xb0a   :  { %v666_v6 = vpop.permute.xlu1 %665 }
 0xb0b   :  { %v668_v7 = vadd.f32 %v666_v6, %v658_v5 }
 0xb0d   :  { %1375 = vtanh.f32 %v668_v7 }
 0xb17   :  { %v1376_v8 = vpop.eup %1375 }
 0xb18   :  { %671 = vrot.lane.b32.xlu0 %v1376_v8, %s1439_s28 }
 0xb8a   :  { %v672_v9 = vpop.permute.xlu0 %671 }
 0xb8b   :  { %v674_v10 = vmul.f32 %v1374_v2, %v672_v9 }
 0xb8d   :  { %676 = vrot.lane.b32.xlu1 %v674_v10, %s1440_s29 }
 0xbff   :  { %v677_v11 = vpop.permute.xlu1 %676 }
 0xc00   :  { %1186 = vmatmul.mubr.msk.f32.vlgmr.msra.gmra.mrb[10].mxu1 %vm270_vm2, %v677_v11 }
 0xc01   :  { %1314 = vmatpush1.bf16.msra.mxu1 %v1477_v20  ;;  %948 = vmatprep.mubr.f32.mxu1 %v1438_v1 }
 0xc02   :  { %1316 = vmatprep.subr.bf16.mxu1 %v1480_v25 }
 0xc05   :  { %1318 = vmatpush1.bf16.msra.mxu1 %v1486_v28 }
 0xc06   :  { %1328 = vmatprep.subr.bf16.mxu1 %v1475_v16 }
 0xcd3   :  { %v746_v12 = vpop.f32.mrb[10].mxu1 }
 0xcd4   :  { %v747_v13 = vadd.f32 %v746_v12, %v1507_v42  ;;  %v748_v14 = vpop.f32.mrb[11].mxu1 }
 0xcd5   :  { %v749_v15 = vadd.f32 %v748_v14, %v1520_v62 }
 0xcd6   :  { %v752_v17 = vadd.f32 %v747_v13, %v1558_v31 }
 0xcd7   :  { %751 = vst [vmem:[%s1662_s2 + $0x18] sm:$0xff] %v749_v15 }
 0xcd8   :  { %1377 = vtanh.f32 %v752_v17  ;;  %v1187_v19 = vmul.f32 -1.442695, %v752_v17 }
 0xcda   :  { %1379 = vpow2.f32 %v1187_v19 }
 0xce2   :  { %v1378_v18 = vpop.eup %1377 }
 0xce3   :  { %762 = vrot.lane.b32.xlu0 %v1378_v18, %s1439_s28 }
 0xce4   :  { %v1380_v21 = vpop.eup %1379 }
 0xce5   :  { %v756_v16 = vadd.f32 1.0, %v1380_v21 }
 0xce7   :  { %1381 = vrcp.f32 %v756_v16 }
 0xcf1   :  { %v1382_v22 = vpop.eup %1381 }
 0xcf2   :  { %v760_v26 = vmul.f32 %v1382_v22, %v668_v7 }
 0xd55   :  { %v763_v23 = vpop.permute.xlu0 %762 }
 0xd56   :  { %v765_v24 = vmul.f32 %v1382_v22, %v763_v23 }
 0xd58   :  { %767 = vrot.lane.b32.xlu1 %v765_v24, %s1440_s29 }
 0xdca   :  { %v768_v27 = vpop.permute.xlu1 %767 }
 0xdcb   :  { %v770_v29 = vadd.f32 %v768_v27, %v760_v26 }
 0xdcd   :  { %1383 = vtanh.f32 %v770_v29 }
 0xdd7   :  { %v1384_v31 = vpop.eup %1383 }
 0xdd8   :  { %773 = vrot.lane.b32.xlu0 %v1384_v31, %s1439_s28 }
 0xe4a   :  { %v774_v34 = vpop.permute.xlu0 %773 }
 0xe4b   :  { %v776_v35 = vmul.f32 %v1382_v22, %v774_v34 }
 0xe4d   :  { %778 = vrot.lane.b32.xlu1 %v776_v35, %s1440_s29 }
 0xebf   :  { %v779_v36 = vpop.permute.xlu1 %778 }
 0xec0   :  { %1188 = vmatmul.mubr.msk.f32.vlgmr.msra.gmra.mrb[8].mxu0 %vm270_vm2, %v779_v36 }
 0xec1   :  { %1322 = vmatpush1.bf16.msra.mxu0 %v1477_v20  ;;  %1050 = vmatprep.mubr.f32.mxu0 %v1438_v1 }
 0xec2   :  { %1324 = vmatprep.subr.bf16.mxu0 %v1480_v25 }
 0xec5   :  { %1326 = vmatpush1.bf16.msra.mxu0 %v1486_v28 }
 0xf93   :  { %v848_v37 = vpop.f32.mrb[8].mxu0 }
 0xf94   :  { %v849_v38 = vadd.f32 %v848_v37, %v1507_v42  ;;  %v850_v39 = vpop.f32.mrb[9].mxu0 }
 0xf95   :  { %v851_v40 = vadd.f32 %v850_v39, %v1520_v62 }
 0xf96   :  { %v854_v41 = vadd.f32 %v1556_v30, %v849_v38 }
 0xf97   :  { %853 = vst [vmem:[%s1662_s2 + $0x20] sm:$0xff] %v851_v40 }
 0xf98   :  { %1385 = vtanh.f32 %v854_v41  ;;  %v1189_v44 = vmul.f32 -1.442695, %v854_v41 }
 0xf9a   :  { %1387 = vpow2.f32 %v1189_v44 }
 0xfa2   :  { %v1386_v43 = vpop.eup %1385 }
 0xfa3   :  { %864 = vrot.lane.b32.xlu0 %v1386_v43, %s1439_s28 }
 0xfa4   :  { %v1388_v45 = vpop.eup %1387 }
 0xfa5   :  { %v858_v46 = vadd.f32 1.0, %v1388_v45 }
 0xfa7   :  { %1389 = vrcp.f32 %v858_v46 }
 0xfb1   :  { %v1390_v47 = vpop.eup %1389 }
 0xfb2   :  { %v862_v50 = vmul.f32 %v1390_v47, %v770_v29 }
0x1015   :  { %v865_v48 = vpop.permute.xlu0 %864 }
0x1016   :  { %v867_v49 = vmul.f32 %v1390_v47, %v865_v48 }
0x1018   :  { %869 = vrot.lane.b32.xlu1 %v867_v49, %s1440_s29 }
0x108a   :  { %v870_v30 = vpop.permute.xlu1 %869 }
0x108b   :  { %v872_v51 = vadd.f32 %v870_v30, %v862_v50 }
0x108d   :  { %1391 = vtanh.f32 %v872_v51 }
0x1097   :  { %v1392_v52 = vpop.eup %1391 }
0x1098   :  { %875 = vrot.lane.b32.xlu0 %v1392_v52, %s1439_s28 }
0x110a   :  { %v876_v53 = vpop.permute.xlu0 %875 }
0x110b   :  { %v878_v54 = vmul.f32 %v1390_v47, %v876_v53 }
0x110d   :  { %880 = vrot.lane.b32.xlu1 %v878_v54, %s1440_s29 }
0x117f   :  { %v881_v55 = vpop.permute.xlu1 %880 }
0x1180   :  { %1190 = vmatmul.mubr.msk.f32.vlgmr.msra.gmra.mrb[12].mxu1 %vm270_vm2, %v881_v55 }
0x1181   :  { %1330 = vmatpush1.bf16.msra.mxu1 %v1477_v20  ;;  %1152 = vmatprep.mubr.f32.mxu1 %v1438_v1 }
0x1182   :  { %1332 = vmatprep.subr.bf16.mxu1 %v1480_v25 }
0x1185   :  { %1334 = vmatpush1.bf16.msra.mxu1 %v1486_v28 }
0x1253   :  { %v950_v56 = vpop.f32.mrb[12].mxu1 }
0x1254   :  { %v951_v57 = vadd.f32 %v950_v56, %v1507_v42  ;;  %v952_v58 = vpop.f32.mrb[13].mxu1 }
0x1255   :  { %v953_v59 = vadd.f32 %v952_v58, %v1520_v62 }
0x1256   :  { %v956_v60 = vadd.f32 %v951_v57, %v1562_v33 }
0x1257   :  { %955 = vst [vmem:[%s1662_s2 + $0x28] sm:$0xff] %v953_v59 }
0x1258   :  { %1393 = vtanh.f32 %v956_v60  ;;  %v1191_v1 = vmul.f32 -1.442695, %v956_v60 }
0x125a   :  { %1395 = vpow2.f32 %v1191_v1 }
0x1262   :  { %v1394_v20 = vpop.eup %1393 }
0x1263   :  { %966 = vrot.lane.b32.xlu0 %v1394_v20, %s1439_s28 }
0x1264   :  { %v1396_v25 = vpop.eup %1395 }
0x1265   :  { %v960_v28 = vadd.f32 1.0, %v1396_v25 }
0x1267   :  { %1397 = vrcp.f32 %v960_v28 }
0x1271   :  { %v1398_v61 = vpop.eup %1397 }
0x1272   :  { %v964_v2 = vmul.f32 %v1398_v61, %v872_v51 }
0x12d5   :  { %v967_v63 = vpop.permute.xlu0 %966 }
0x12d6   :  { %v969_v0 = vmul.f32 %v1398_v61, %v967_v63 }
0x12d8   :  { %971 = vrot.lane.b32.xlu1 %v969_v0, %s1440_s29 }
0x134a   :  { %v972_v33 = vpop.permute.xlu1 %971 }
0x134b   :  { %v974_v3 = vadd.f32 %v972_v33, %v964_v2 }
0x134d   :  { %1399 = vtanh.f32 %v974_v3 }
0x1357   :  { %v1400_v4 = vpop.eup %1399 }
0x1358   :  { %977 = vrot.lane.b32.xlu0 %v1400_v4, %s1439_s28 }
0x13ca   :  { %v978_v5 = vpop.permute.xlu0 %977 }
0x13cb   :  { %v980_v6 = vmul.f32 %v1398_v61, %v978_v5 }
0x13cd   :  { %982 = vrot.lane.b32.xlu1 %v980_v6, %s1440_s29 }
0x143f   :  { %v983_v7 = vpop.permute.xlu1 %982 }
0x1440   :  { %1192 = vmatmul.mubr.msk.f32.vlgmr.msra.gmra.mrb[10].mxu0 %vm270_vm2, %v983_v7 }
0x1513   :  { %v1052_v8 = vpop.f32.mrb[10].mxu0 }
0x1514   :  { %v1053_v9 = vadd.f32 %v1052_v8, %v1507_v42  ;;  %v1054_v10 = vpop.f32.mrb[11].mxu0 }
0x1515   :  { %v1055_v11 = vadd.f32 %v1054_v10, %v1520_v62 }
0x1516   :  { %v1058_v12 = vadd.f32 %v1560_v32, %v1053_v9 }
0x1517   :  { %1057 = vst [vmem:[%s1662_s2 + $0x30] sm:$0xff] %v1055_v11 }
0x1518   :  { %1401 = vtanh.f32 %v1058_v12  ;;  %v1193_v14 = vmul.f32 -1.442695, %v1058_v12 }
0x151a   :  { %1403 = vpow2.f32 %v1193_v14 }
0x1522   :  { %v1402_v13 = vpop.eup %1401 }
0x1523   :  { %1068 = vrot.lane.b32.xlu0 %v1402_v13, %s1439_s28 }
0x1524   :  { %v1404_v15 = vpop.eup %1403 }
0x1525   :  { %v1062_v17 = vadd.f32 1.0, %v1404_v15 }
0x1527   :  { %1405 = vrcp.f32 %v1062_v17 }
0x1531   :  { %v1406_v18 = vpop.eup %1405 }
0x1532   :  { %v1066_v21 = vmul.f32 %v1406_v18, %v974_v3 }
0x1595   :  { %v1069_v42 = vpop.permute.xlu0 %1068 }
0x1596   :  { %v1071_v19 = vmul.f32 %v1406_v18, %v1069_v42 }
0x1598   :  { %1073 = vrot.lane.b32.xlu1 %v1071_v19, %s1440_s29 }
0x160a   :  { %v1074_v32 = vpop.permute.xlu1 %1073 }
0x160b   :  { %v1076_v16 = vadd.f32 %v1074_v32, %v1066_v21 }
0x160d   :  { %1407 = vtanh.f32 %v1076_v16 }
0x1617   :  { %v1408_v22 = vpop.eup %1407 }
0x1618   :  { %1079 = vrot.lane.b32.xlu0 %v1408_v22, %s1439_s28 }
0x168a   :  { %v1080_v23 = vpop.permute.xlu0 %1079 }
0x168b   :  { %v1082_v24 = vmul.f32 %v1406_v18, %v1080_v23 }
0x168d   :  { %1084 = vrot.lane.b32.xlu1 %v1082_v24, %s1440_s29 }
0x16ff   :  { %v1085_v26 = vpop.permute.xlu1 %1084 }
0x1700   :  { %v1160_v27 = vsel %vm270_vm2, %v1085_v26, %v1076_v16  ;;  %1194 = vmatmul.mubr.msk.f32.vlgmr.msra.gmra.mrb[14].mxu1 %vm270_vm2, %v1085_v26 }
0x1701   :  { %v1162_v29 = vsel %vm1161_vm3, %v1160_v27, 0.0 }
0x1702   :  { %1163 = vst [vmem:[%s1662_s2 + $0x40] sm:$0xff] %v1162_v29 }
0x17d3   :  { %v1154_v31 = vpop.f32.mrb[14].mxu1 }
0x17d4   :  { %v1155_v34 = vpop.f32.mrb[15].mxu1 }
0x17d5   :  { %v1156_v35 = vadd.f32 %v1155_v34, %v1520_v62 }
0x17d7   :  { %1158 = vst [vmem:[%s1662_s2 + $0x38] sm:$0xff] %v1156_v35 }
0x17d8   :  { %1168 = vsyncpa [#allocation3], 1 }

</bundles_post_ra>
